<compile_context>
chip_gen: v7x
topology: tpu7x:2x2x1
jax: 0.10.0
libtpu: 0.0.40
codegen_flags: <defaults>
</compile_context>

<pallas_src>
import jax
import jax.numpy as jnp
from jax.experimental import pallas as pl
from jax.experimental.pallas import tpu as pltpu

HIDDEN = 20          # fc1 output width (from the PyTorch module)
NOUT_PAD = 128       # lane-dense padded output width


def mlp_kernel(x_ref, w1_ref, b1_ref, w2_ref, b2_ref, o_ref):
    # fc1 + relu  (matmul on the MXU, bias/ReLU on the VPU)
    h = jnp.dot(x_ref[...], w1_ref[...], preferred_element_type=jnp.float32)
    h = jnp.maximum(h + b1_ref[...], 0.0)                  # (TB, 20)
    # fc2 into a 128-wide (lane-dense) padded output slab
    o = jnp.dot(h.astype(w2_ref.dtype), w2_ref[...],
                preferred_element_type=jnp.float32)
    o_ref[...] = (o + b2_ref[...]).astype(o_ref.dtype)     # (TB, 128)


def _round_up(n, m):
    return (n + m - 1) // m * m


def network_forward(x, w1, b1, w2, b2, *, tb=256):
    """x: (B, input_size) f32; w1: (input_size, 20); b1: (1, 20);
       w2: (20, output_size); b2: (1, output_size) -> (B, output_size) f32.

    NOTE: on v6e/v7x, casting x/w1/w2 to bfloat16 (keeping f32 accumulate)
    halves DMA bytes and uses the native bf16 MXU path; kept f32 here to match
    the PyTorch reference bit-for-bit at fp32 tolerance.
    """
    B, K = x.shape
    H, out_size = w2.shape

    # Pad fc2 weight/bias to a lane-dense 128-wide output slab (zeros beyond
    # out_size -> extra lanes just carry b2's padding, sliced off below).
    w2p = jnp.zeros((H, NOUT_PAD), w2.dtype).at[:, :out_size].set(w2)
    b2p = jnp.zeros((1, NOUT_PAD), b2.dtype).at[:, :out_size].set(b2)

    # Batch tile: multiple of 8 (f32 sublane), capped at 256 (vreg budget for
    # the (TB, 128) f32 hidden/output tiles; also tiny vs v7x's 64 MiB VMEM).
    TB = min(tb, _round_up(B, 8))
    B_pad = _round_up(B, TB)
    if B_pad != B:
        x = jnp.pad(x, ((0, B_pad - B), (0, 0)))
    grid = (B_pad // TB,)

    out = pl.pallas_call(
        mlp_kernel,
        out_shape=jax.ShapeDtypeStruct((B_pad, NOUT_PAD), jnp.float32),
        grid=grid,
        in_specs=[
            pl.BlockSpec((TB, K), lambda i: (i, 0)),          # x: streamed tiles
            pl.BlockSpec((K, H), lambda i: (0, 0)),           # w1: VMEM-resident
            pl.BlockSpec((1, H), lambda i: (0, 0)),           # b1
            pl.BlockSpec((H, NOUT_PAD), lambda i: (0, 0)),    # w2 (padded)
            pl.BlockSpec((1, NOUT_PAD), lambda i: (0, 0)),    # b2 (padded)
        ],
        out_specs=pl.BlockSpec((TB, NOUT_PAD), lambda i: (i, 0)),
        compiler_params=pltpu.CompilerParams(
            dimension_semantics=("parallel",)),
    )(x, w1, b1, w2p, b2p)

    return out[:B, :out_size]


def init_params(key, input_size, output_size, hidden=HIDDEN):
    """Matches Network.initialize_weights(): W ~ N(0, 0.1), b = 0.01."""
    k1, k2 = jax.random.split(key)
    w1 = 0.1 * jax.random.normal(k1, (input_size, hidden), dtype=jnp.float32)
    b1 = jnp.full((1, hidden), 0.01, dtype=jnp.float32)
    w2 = 0.1 * jax.random.normal(k2, (hidden, output_size), dtype=jnp.float32)
    b2 = jnp.full((1, output_size), 0.01, dtype=jnp.float32)
    return w1, b1, w2, b2


if __name__ == "__main__":
    key = jax.random.PRNGKey(0)
    kx, kx2, kp = jax.random.split(key, 3)

    input_size = 32      # e.g. observation dim for the A2C agent
    output_size = 4      # e.g. number of actions
    w1, b1, w2, b2 = init_params(kp, input_size, output_size)

    def ref_fn(x):
        return jnp.maximum(x @ w1 + b1, 0.0) @ w2 + b2

    # Small batch (single grid step, TB = 8)
    x_small = jax.random.normal(kx, (8, input_size), dtype=jnp.float32)
    out_small = jax.block_until_ready(network_forward(x_small, w1, b1, w2, b2))
    assert out_small.shape == (8, output_size)
    assert jnp.allclose(out_small, ref_fn(x_small), atol=1e-5, rtol=1e-5)

    # Non-multiple batch (exercises tiling + batch padding path)
    x_big = jax.random.normal(kx2, (37, input_size), dtype=jnp.float32)
    out_big = jax.block_until_ready(network_forward(x_big, w1, b1, w2, b2, tb=16))
    assert out_big.shape == (37, output_size)
    assert jnp.allclose(out_big, ref_fn(x_big), atol=1e-5, rtol=1e-5)

    print("KERNEL_OK")
</pallas_src>

<mosaic_0001>
module attributes {stable_mosaic.version = 11 : i64} {
  func.func @mlp_kernel(%arg0: i32, %arg1: memref<8x32xf32, #tpu.memory_space<vmem>>, %arg2: memref<32x20xf32, #tpu.memory_space<vmem>>, %arg3: memref<1x20xf32, #tpu.memory_space<vmem>>, %arg4: memref<20x128xf32, #tpu.memory_space<vmem>>, %arg5: memref<1x128xf32, #tpu.memory_space<vmem>>, %arg6: memref<8x128xf32, #tpu.memory_space<vmem>>) attributes {dimension_semantics = [#tpu.dimension_semantics<parallel>], iteration_bounds = array<i64: 1>, scalar_prefetch = 0 : i64, scratch_operands = 0 : i64, tpu.core_type = #tpu.core_type<tc>, window_params = [{transform_indices = @transform_0, window_bounds = array<i64: 8, 32>}, {pipeline_mode = #tpu.pipeline_mode<synchronous>, transform_indices = @transform_1, window_bounds = array<i64: 32, 20>}, {pipeline_mode = #tpu.pipeline_mode<synchronous>, transform_indices = @transform_2, window_bounds = array<i64: 1, 20>}, {pipeline_mode = #tpu.pipeline_mode<synchronous>, transform_indices = @transform_3, window_bounds = array<i64: 20, 128>}, {pipeline_mode = #tpu.pipeline_mode<synchronous>, transform_indices = @transform_4, window_bounds = array<i64: 1, 128>}, {transform_indices = @transform_5, window_bounds = array<i64: 8, 128>}]} {
    %c0 = arith.constant 0 : index
    %c0_0 = arith.constant 0 : index
    %0 = vector.load %arg1[%c0, %c0_0] : memref<8x32xf32, #tpu.memory_space<vmem>>, vector<8x32xf32>
    %c0_1 = arith.constant 0 : index
    %c0_2 = arith.constant 0 : index
    %1 = vector.load %arg2[%c0_1, %c0_2] : memref<32x20xf32, #tpu.memory_space<vmem>>, vector<32x20xf32>
    %cst = arith.constant dense<0.000000e+00> : vector<8x20xf32>
    %2 = tpu.matmul %0, %1, %cst {dimension_numbers = #tpu.dot_dimension_numbers<[1], [0], [0], [1], [0, 0, 1, 1], [], []>} : vector<8x32xf32>, vector<32x20xf32>, vector<8x20xf32> -> vector<8x20xf32>
    %c0_3 = arith.constant 0 : index
    %c0_4 = arith.constant 0 : index
    %3 = vector.load %arg3[%c0_3, %c0_4] : memref<1x20xf32, #tpu.memory_space<vmem>>, vector<1x20xf32>
    %4 = vector.broadcast %3 : vector<1x20xf32> to vector<8x20xf32>
    %5 = arith.addf %2, %4 : vector<8x20xf32>
    %cst_5 = arith.constant 0.000000e+00 : f32
    %6 = vector.broadcast %cst_5 : f32 to vector<8x20xf32>
    %7 = arith.maximumf %5, %6 : vector<8x20xf32>
    %c0_6 = arith.constant 0 : index
    %c0_7 = arith.constant 0 : index
    %8 = vector.load %arg4[%c0_6, %c0_7] : memref<20x128xf32, #tpu.memory_space<vmem>>, vector<20x128xf32>
    %cst_8 = arith.constant dense<0.000000e+00> : vector<8x128xf32>
    %9 = tpu.matmul %7, %8, %cst_8 {dimension_numbers = #tpu.dot_dimension_numbers<[1], [0], [0], [1], [0, 0, 1, 1], [], []>} : vector<8x20xf32>, vector<20x128xf32>, vector<8x128xf32> -> vector<8x128xf32>
    %c0_9 = arith.constant 0 : index
    %c0_10 = arith.constant 0 : index
    %10 = vector.load %arg5[%c0_9, %c0_10] : memref<1x128xf32, #tpu.memory_space<vmem>>, vector<1x128xf32>
    %11 = vector.broadcast %10 : vector<1x128xf32> to vector<8x128xf32>
    %12 = arith.addf %9, %11 : vector<8x128xf32>
    %c0_11 = arith.constant 0 : index
    %c0_12 = arith.constant 0 : index
    %13 = vector.load %arg6[%c0_11, %c0_12] : memref<8x128xf32, #tpu.memory_space<vmem>>, vector<8x128xf32>
    tpu.vector_store %arg6[%c0_11, %c0_12], %12 {strides = array<i32>} : memref<8x128xf32, #tpu.memory_space<vmem>>, vector<8x128xf32>,
    return
  }
  func.func @transform_0(%arg0: i32) -> (i32, i32) {
    %c0_i32 = arith.constant 0 : i32
    %c0_i32_0 = arith.constant 0 : i32
    return %arg0, %c0_i32 : i32, i32
  }
  func.func @transform_1(%arg0: i32) -> (i32, i32) {
    %c0_i32 = arith.constant 0 : i32
    %c0_i32_0 = arith.constant 0 : i32
    %c0_i32_1 = arith.constant 0 : i32
    return %c0_i32, %c0_i32_0 : i32, i32
  }
  func.func @transform_2(%arg0: i32) -> (i32, i32) {
    %c0_i32 = arith.constant 0 : i32
    %c0_i32_0 = arith.constant 0 : i32
    %c0_i32_1 = arith.constant 0 : i32
    return %c0_i32, %c0_i32_0 : i32, i32
  }
  func.func @transform_3(%arg0: i32) -> (i32, i32) {
    %c0_i32 = arith.constant 0 : i32
    %c0_i32_0 = arith.constant 0 : i32
    %c0_i32_1 = arith.constant 0 : i32
    return %c0_i32, %c0_i32_0 : i32, i32
  }
  func.func @transform_4(%arg0: i32) -> (i32, i32) {
    %c0_i32 = arith.constant 0 : i32
    %c0_i32_0 = arith.constant 0 : i32
    %c0_i32_1 = arith.constant 0 : i32
    return %c0_i32, %c0_i32_0 : i32, i32
  }
  func.func @transform_5(%arg0: i32) -> (i32, i32) {
    %c0_i32 = arith.constant 0 : i32
    %c0_i32_0 = arith.constant 0 : i32
    return %arg0, %c0_i32 : i32, i32
  }
}

</mosaic_0001>

<bundles_post_ra>
// kernel: tpu_custom_call.1
= control target key start
LH: loop header
LB: loop body
LE: loop exit
PB: predicated region body
PF: predicated region fallthrough
CT: control target
= control target key end

     0   :  { %v282_v3 = vmov 0.0|0.0   ;;  %vm283_vm0 = vmmov 0   ;;  %v284_v6 = vmov 0.0   ;;  %s358_s0 = inlined_call_operand.vmem [shape: f32[8,32], index: 0, kind: input, shape index: {}]   ;;  %s359_s1 = inlined_call_operand.vmem [shape: f32[32,20], index: 1, kind: input, shape index: {}]   ;;  %s360_s2 = inlined_call_operand.vmem [shape: f32[1,20], index: 2, kind: input, shape index: {}]   ;;  %s361_s3 = inlined_call_operand.vmem [shape: f32[20,128], index: 3, kind: input, shape index: {}]   ;;  %s362_s4 = inlined_call_operand.vmem [shape: f32[1,128], index: 4, kind: input, shape index: {}]   ;;  %s363_s5 = inlined_call_operand.hbm [shape: f32[8,128], index: 5, kind: output, shape index: {}]  }
   0x1   :  { %v22_v0 = vld [vmem:[%s359_s1] sm:$0xff]  ;;  %v23_v1 = vld [vmem:[%s359_s1 + $0x8] sm:$0xff]  ;;  %v24_v2 = vld [vmem:[%s359_s1 + $0x10] sm:$0xff]  ;;  %245 = vmatprep.subr.bf16.mxu0 %v282_v3  ;;  %233 = vmatprep.mubr.msk.f32.mxu0 %vm283_vm0, %v284_v6 }
   0x2   :  { %v246_v4 = vpack.c.bf16 %v23_v1, %v22_v0  ;;  %v25_v5 = vld [vmem:[%s359_s1 + $0x18] sm:$0xff]  ;;  %251 = vmatprep.subr.bf16.mxu1 %v282_v3  ;;  %242 = vmatprep.mubr.msk.f32.mxu1 %vm283_vm0, %v284_v6 }
   0x3   :  { %10 = vsyncpa [#allocation3], 0  ;;  %v249_v7 = vpack.c.bf16 %v25_v5, %v24_v2  ;;  %v21_v8 = vld [vmem:[%s358_s0] sm:$0xff]  ;;  %vm33_vm1 = vcmask 261120   ;;  %v109_v10 = vld [vmem:[%s361_s3 + $0x8] sm:$0xff]  ;;  %vm122_vm2 = vcmask 1043456  }
   0x4   :  { %247 = vmatpush3.bf16.msra.mxu0 %v246_v4  ;;  %v108_v9 = vld [vmem:[%s361_s3] sm:$0xff]  ;;  %v110_v12 = vld [vmem:[%s361_s3 + $0x10] sm:$0xf]  ;;  %vm118_vm3 = vcmask 162816   ;;  %s285_s11 = smov [#allocation2]  }
   0x5   :  { %248 = vmatprep.subr.bf16.mxu0 %v282_v3  ;;  %v252_v11 = vpack.c.bf16 %v109_v10, %v108_v9  ;;  %v211_v13 = vld [vmem:[%s360_s2] ss:$0 sm:$0xff]  ;;  %s203_s12 = sshll.u32 %s285_s11, 4  ;;  %s204_s12 = int_to_ptr.vmem [resolvable:$true] %s203_s12 }
   0x6   :  { %v213_v18 = vld [vmem:[%s362_s4] ss:$0 sm:$0xff]  ;;  %s258_s3 = scalar_lea.vmem %s204_s12, 128  ;;  %p263_p1 = scmp.lt.s32.totalorder %s204_s12, %s204_s12 }
   0x7   :  { %253 = vmatpush3.bf16.msra.mxu1 %v252_v11  ;;  %p259_p0 = scmp.ne.s32.totalorder %s204_s12, %s258_s3  ;;  %p264_p2 = scmp.lt.s32.totalorder %s258_s3, %s258_s3 }
   0x8   :  { %250 = vmatpush3.bf16.msra.mxu0 %v249_v7  ;;  %240 = vmatprep.subr.mxu1 %v284_v6 }
   0x9   :  { %p265_p3 = por %p264_p2, %p263_p1 }
   0xb   :  { %234 = vmatmul.mubr.msk.f32.vlgmr.msra.gmra.mrb[0].mxu0 %vm33_vm1, %v21_v8  ;;  %241 = vmatpush3.msk.msra.mxu1 %vm122_vm2, %v110_v12  ;;  %p266_p4 = pnand %p265_p3, %p259_p0 }
  0xde   :  { %v103_v14 = vpop.f32.mrb[0].mxu0 }
  0xdf   :  { %v104_v15 = vadd.f32 %v211_v13, %v103_v14  ;;  %v235_v16 = vpop.f32.mrb[1].mxu0 }
  0xe1   :  { %v107_v17 = vmax.f32 %v104_v15, 0.0 }
  0xe3   :  { %243 = vmatmul.mubr.msk.f32.vlgmr.msra.gmra.mrb[0].mxu1 %vm118_vm3, %v107_v17 }
 0x1b6   :  { %v192_v19 = vpop.f32.mrb[0].mxu1 }
 0x1b7   :  { %v193_v20 = vadd.f32 %v213_v18, %v192_v19  ;;  %v244_v21 = vpop.f32.mrb[1].mxu1 }
 0x1b9   :  { %196 = vst [vmem:[#allocation2] sm:$0xff] %v193_v20 }
 0x1ba   :  { %269 = shalt.err (!%p266_p4)
}
 0x1bb   :  { %s270_s14 = scalar_lea.hbm %s363_s5, 128 }
 0x1bc   :  { %p271_p5 = scmp.ne.s32.totalorder %s363_s5, %s270_s14  ;;  %p274_p6 = scmp.lt.u32.totalorder %s270_s14, %s363_s5 }
 0x1be   :  { %p276_p7 = pnand %p274_p6, %p271_p5 }
 0x1c0   :  { %279 = shalt.err (!%p276_p7)
}
 0x1c1   :  { %206 = dma.vmem_to_hbm [thread:$0]  %s204_s12, 128, %s363_s5, [#allocation3]  }
 0x1c2   :  { %280 = dma.done.wait [#allocation3], 128  }
 0x1c3   :  { %281 = vsyncadd [#allocation3], 4294967168 }
 0x1c4   :  { %210 = vsyncpa [#allocation3], 1 }

</bundles_post_ra>
